<compile_context>
chip_gen: v5e
topology: v5e:2x2
jax: 0.10.0
libtpu: 0.0.40
codegen_flags: <defaults>
</compile_context>

<pallas_src>
import functools

import jax
import jax.numpy as jnp
import numpy as np
from jax.experimental import pallas as pl
from jax.experimental.pallas import tpu as pltpu

_NEG_BIG = -1e30
_DUMMY_BOX = (0.5, 0.5, 1.0, 1.0)   # valid box used for padding (avoids 0/0)


def _round_up(x, m):
    return ((x + m - 1) // m) * m


# ---------------------------------------------------------------------------
# Pallas kernel: one row-tile of the full HOI matching cost matrix C.
# ---------------------------------------------------------------------------
def _matcher_cost_kernel(obj_logits_ref,      # [tn, Co_pad]  f32
                         verb_logits_ref,     # [tn, Cv_pad]  f32
                         pred_feat_ref,       # [tn, 32]      f32 (sub @0.., obj @16..)
                         class_rhs_ref,       # [Co_pad+Cv_pad, T_pad] bf16 (weights folded)
                         verb_ab_ref,         # [8, T_pad]    f32 rows: a_j, b_j
                         tsub_feat_ref,       # [16, T_pad]   cx,cy,w,h,x0,y0,x1,y1,area
                         tobj_feat_ref,       # [16, T_pad]   + nonzero, allzero masks
                         cost_ref,            # [tn, T_pad]
                         *, w_bbox, w_giou):
    # ---- fused class costs: one bf16 K=(Co_pad+Cv_pad) MXU contraction ------
    logits = obj_logits_ref[...]
    e = jnp.exp(logits - jnp.max(logits, axis=-1, keepdims=True))
    inv_z = 1.0 / jnp.sum(e, axis=-1, keepdims=True)        # exact; only [tn,1]
    softmax_p = e * inv_z

    p = jax.nn.sigmoid(verb_logits_ref[...])                 # [tn, Cv_pad]
    row_p = jnp.sum(p, axis=-1, keepdims=True)               # [tn, 1]

    lhs = jnp.concatenate([softmax_p, p], axis=-1).astype(jnp.bfloat16)
    cost = jnp.dot(lhs, class_rhs_ref[...],
                   preferred_element_type=jnp.float32)       # [tn, T]
    # verb leftover from (1-p)(1-t)^T, reduced to an affine term per column.
    cost = cost + (verb_ab_ref[0:1, :] + verb_ab_ref[1:2, :] * row_p)

    # ---- pairwise box costs ('split_max'); all per-box geometry precomputed --
    pf = pred_feat_ref[...]
    tsub = tsub_feat_ref[...]
    tobj = tobj_feat_ref[...]
    obj_nonzero = tobj[9:10, :]                               # [1, T]
    obj_allzero = tobj[10:11, :]

    def cdist_l1(off, tgt):
        c = jnp.abs(pf[:, off + 0:off + 1] - tgt[0:1, :])
        for k in range(1, 4):
            c = c + jnp.abs(pf[:, off + k:off + k + 1] - tgt[k:k + 1, :])
        return c

    def neg_giou(off, tgt):
        px0 = pf[:, off + 4:off + 5]
        py0 = pf[:, off + 5:off + 6]
        px1 = pf[:, off + 6:off + 7]
        py1 = pf[:, off + 7:off + 8]
        area_p = pf[:, off + 8:off + 9]                       # [tn, 1]
        tx0, ty0 = tgt[4:5, :], tgt[5:6, :]
        tx1, ty1 = tgt[6:7, :], tgt[7:8, :]
        area_t = tgt[8:9, :]                                  # [1, T]
        inter = (jnp.maximum(jnp.minimum(px1, tx1) - jnp.maximum(px0, tx0), 0.0)
                 * jnp.maximum(jnp.minimum(py1, ty1) - jnp.maximum(py0, ty0), 0.0))
        union = area_p + area_t - inter
        earea = ((jnp.maximum(px1, tx1) - jnp.minimum(px0, tx0))
                 * (jnp.maximum(py1, ty1) - jnp.minimum(py0, ty0)))
        # giou = inter/union - (earea-union)/earea, with a single reciprocal.
        num = inter * earea - (earea - union) * union
        return -(num * pl.reciprocal(union * earea, approx=True))

    cost = cost + w_bbox * jnp.maximum(cdist_l1(0, tsub),
                                       cdist_l1(16, tobj) * obj_nonzero)
    c_sub = neg_giou(0, tsub)
    cost = cost + w_giou * jnp.maximum(c_sub, neg_giou(16, tobj) + c_sub * obj_allzero)

    cost_ref[...] = cost


# ---------------------------------------------------------------------------
# Wrapper: pad/transpose/precompute, call the kernel, slice the result.
# ---------------------------------------------------------------------------
def hungarian_matcher_hoi_cost(outputs, targets, *, cost_obj_class=1.0,
                               cost_verb_class=1.0, cost_bbox=1.0,
                               cost_giou=1.0, box_matcher='split_max'):
    assert box_matcher == 'split_max'
    # TODO(synk): 'union_split_sum' requires union_box(), which is not defined
    # in the reference snippet; only the default 'split_max' matcher is done.

    f32 = jnp.float32
    bs, nq, n_obj_cls = outputs['pred_obj_logits'].shape
    n_verb_cls = outputs['pred_verb_logits'].shape[-1]
    N = bs * nq

    tgt_obj_labels = jnp.concatenate([t['obj_labels'] for t in targets])
    tgt_verb_labels = jnp.concatenate([t['verb_labels'] for t in targets]).astype(f32)
    tgt_sub_boxes = jnp.concatenate([t['sub_boxes'] for t in targets]).astype(f32)
    tgt_obj_boxes = jnp.concatenate([t['obj_boxes'] for t in targets]).astype(f32)
    T = int(tgt_obj_labels.shape[0])

    # ---- padded sizes (lane-dense output, one dense K=256 MXU contraction)
    co_pad = _round_up(n_obj_cls, 128)
    cv_pad = _round_up(n_verb_cls, 128)
    t_pad = _round_up(max(T, 1), 128)
    K = co_pad + cv_pad

    # Row tiling: keep >= 2 grid steps whenever possible so the "parallel" axis
    # can shard across TensorCores (v7x) and pipeline the input DMA.
    if N <= 8:
        tn = 8
    else:
        tn = min(256, _round_up(-(-N // 2), 8))
    n_pad = _round_up(max(N, 1), tn)
    # TODO(synk): for very large target counts (t_pad >> a few K) add a second
    # "parallel" grid axis tiling T to bound replicated-constant VMEM (v7x 64MiB).

    # ---- predictions: pad rows and class lanes ------------------------------
    obj_logits = jnp.full((n_pad, co_pad), _NEG_BIG, f32).at[:N, :n_obj_cls].set(
        outputs['pred_obj_logits'].reshape(N, n_obj_cls).astype(f32))
    verb_logits = jnp.full((n_pad, cv_pad), _NEG_BIG, f32).at[:N, :n_verb_cls].set(
        outputs['pred_verb_logits'].reshape(N, n_verb_cls).astype(f32))

    dummy = jnp.asarray(_DUMMY_BOX, f32)
    sub_boxes = jnp.tile(dummy, (n_pad, 1)).at[:N].set(
        outputs['pred_sub_boxes'].reshape(N, 4).astype(f32))
    obj_boxes = jnp.tile(dummy, (n_pad, 1)).at[:N].set(
        outputs['pred_obj_boxes'].reshape(N, 4).astype(f32))

    def box_rows(bx):                      # [n,4] cxcywh -> [n,9] feature columns
        cx, cy, w, h = bx[:, 0], bx[:, 1], bx[:, 2], bx[:, 3]
        x0, y0 = cx - 0.5 * w, cy - 0.5 * h
        x1, y1 = cx + 0.5 * w, cy + 0.5 * h
        return jnp.stack([cx, cy, w, h, x0, y0, x1, y1, (x1 - x0) * (y1 - y0)],
                         axis=-1)

    pred_feat = jnp.zeros((n_pad, 32), f32)
    pred_feat = pred_feat.at[:, 0:9].set(box_rows(sub_boxes))
    pred_feat = pred_feat.at[:, 16:25].set(box_rows(obj_boxes))

    # ---- targets: fused bf16 class RHS, affine verb leftover, box features ---
    # NB: one_hot silently zeroes out labels >= n_obj_cls; labels must be valid.
    onehot = jax.nn.one_hot(tgt_obj_labels, n_obj_cls, dtype=f32)            # [T, Co]
    col_t = jnp.sum(tgt_verb_labels, axis=-1)                                # [T]
    ipd = 1.0 / (col_t + 1e-4)                                               # 1/pos_den
    ind = 1.0 / (float(n_verb_cls) - col_t + 1e-4)                           # 1/neg_den

    class_rhs = jnp.zeros((K, t_pad), f32)
    class_rhs = class_rhs.at[:n_obj_cls, :T].set(
        -float(cost_obj_class) * onehot.T)
    verb_scale = -0.5 * float(cost_verb_class) * (ipd + ind)                 # [T]
    class_rhs = class_rhs.at[co_pad:co_pad + n_verb_cls, :T].set(
        tgt_verb_labels.T * verb_scale[None, :])
    class_rhs = class_rhs.astype(jnp.bfloat16)   # 0/-w_obj exact; verb scale ~bf16

    verb_ab = jnp.zeros((8, t_pad), f32)
    verb_ab = verb_ab.at[0, :T].set(
        -0.5 * float(cost_verb_class) * (float(n_verb_cls) - col_t) * ind)   # a_j
    verb_ab = verb_ab.at[1, :T].set(0.5 * float(cost_verb_class) * ind)      # b_j

    def tgt_box_feat(boxes, with_masks):
        pad_rows = jnp.tile(dummy, (t_pad - T, 1))
        bx = jnp.concatenate([boxes, pad_rows], axis=0)                      # [t_pad, 4]
        cx, cy, w, h = bx[:, 0], bx[:, 1], bx[:, 2], bx[:, 3]
        x0, y0 = cx - 0.5 * w, cy - 0.5 * h
        x1, y1 = cx + 0.5 * w, cy + 0.5 * h
        rows = [cx, cy, w, h, x0, y0, x1, y1, (x1 - x0) * (y1 - y0)]
        if with_masks:
            rows.append(jnp.any(bx != 0.0, axis=-1).astype(f32))             # nonzero
            rows.append(jnp.all(bx == 0.0, axis=-1).astype(f32))             # allzero
        return jnp.zeros((16, t_pad), f32).at[:len(rows)].set(jnp.stack(rows))

    tsub_feat = tgt_box_feat(tgt_sub_boxes, with_masks=False)
    tobj_feat = tgt_box_feat(tgt_obj_boxes, with_masks=True)

    kernel = functools.partial(_matcher_cost_kernel,
                               w_bbox=float(cost_bbox), w_giou=float(cost_giou))

    def tiled(shape):
        return pl.BlockSpec(shape, lambda i: (i, 0))

    def replicated(shape):
        return pl.BlockSpec(shape, lambda i: (0, 0))

    # Advisory cost estimate so XLA schedules surrounding ops around the call.
    flops = 2 * n_pad * K * t_pad + 48 * n_pad * t_pad
    transcendentals = n_pad * (co_pad + cv_pad) + 2 * n_pad * t_pad
    bytes_accessed = ((obj_logits.size + verb_logits.size + pred_feat.size
                       + verb_ab.size + tsub_feat.size + tobj_feat.size
                       + n_pad * t_pad) * 4 + class_rhs.size * 2)

    # Explicit VMEM bound: per-step tiles (double-buffered) + replicated
    # constants + output; v5e's 16 MiB scoped default is too small at large T.
    vmem_est = (2 * tn * (co_pad + cv_pad + 128) * 4
                + 2 * K * t_pad * 2
                + 2 * (8 + 16 + 16) * t_pad * 4
                + 2 * tn * t_pad * 4)
    vmem_limit = int(min(max(2 * vmem_est, 32 * 1024 * 1024), 64 * 1024 * 1024))

    cost = pl.pallas_call(
        kernel,
        out_shape=jax.ShapeDtypeStruct((n_pad, t_pad), f32),
        grid=(n_pad // tn,),
        in_specs=[tiled((tn, co_pad)),
                  tiled((tn, cv_pad)),
                  tiled((tn, 32)),
                  replicated((K, t_pad)),
                  replicated((8, t_pad)),
                  replicated((16, t_pad)),
                  replicated((16, t_pad))],
        out_specs=tiled((tn, t_pad)),
        compiler_params=pltpu.CompilerParams(
            dimension_semantics=("parallel",),
            vmem_limit_bytes=vmem_limit),
        cost_estimate=pl.CostEstimate(flops=int(flops),
                                      transcendentals=int(transcendentals),
                                      bytes_accessed=int(bytes_accessed)),
    )(obj_logits, verb_logits, pred_feat, class_rhs, verb_ab, tsub_feat, tobj_feat)

    # TODO(synk): per-image linear_sum_assignment (Hungarian algorithm) is a
    # sequential host/CPU step with no Pallas equivalent; run it on C host-side.
    # Padded rows/columns hold garbage by design; keep this [:N, :T] slice.
    return cost[:N, :T].reshape(bs, nq, T)


# ---------------------------------------------------------------------------
# Pure-JAX reference (mirrors the PyTorch math) for a correctness check.
# ---------------------------------------------------------------------------
def _cdist_l1_ref(a, b):
    return jnp.sum(jnp.abs(a[:, None, :] - b[None, :, :]), axis=-1)


def _giou_ref(a, b):
    ax0, ay0 = a[:, 0] - 0.5 * a[:, 2], a[:, 1] - 0.5 * a[:, 3]
    ax1, ay1 = a[:, 0] + 0.5 * a[:, 2], a[:, 1] + 0.5 * a[:, 3]
    bx0, by0 = b[:, 0] - 0.5 * b[:, 2], b[:, 1] - 0.5 * b[:, 3]
    bx1, by1 = b[:, 0] + 0.5 * b[:, 2], b[:, 1] + 0.5 * b[:, 3]
    area_a = (ax1 - ax0) * (ay1 - ay0)
    area_b = (bx1 - bx0) * (by1 - by0)
    inter = (jnp.clip(jnp.minimum(ax1[:, None], bx1[None, :])
                      - jnp.maximum(ax0[:, None], bx0[None, :]), 0.0)
             * jnp.clip(jnp.minimum(ay1[:, None], by1[None, :])
                        - jnp.maximum(ay0[:, None], by0[None, :]), 0.0))
    union = area_a[:, None] + area_b[None, :] - inter
    iou = inter / union
    earea = ((jnp.maximum(ax1[:, None], bx1[None, :])
              - jnp.minimum(ax0[:, None], bx0[None, :]))
             * (jnp.maximum(ay1[:, None], by1[None, :])
                - jnp.minimum(ay0[:, None], by0[None, :])))
    return iou - (earea - union) / earea


def _reference_cost(outputs, targets, w_obj=1.0, w_verb=1.0, w_bbox=1.0,
                    w_giou=1.0):
    bs, nq, n_obj_cls = outputs['pred_obj_logits'].shape
    n_verb_cls = outputs['pred_verb_logits'].shape[-1]
    obj_prob = jax.nn.softmax(
        outputs['pred_obj_logits'].reshape(bs * nq, n_obj_cls), axis=-1)
    verb_prob = jax.nn.sigmoid(
        outputs['pred_verb_logits'].reshape(bs * nq, n_verb_cls))
    sub = outputs['pred_sub_boxes'].reshape(bs * nq, 4)
    obj = outputs['pred_obj_boxes'].reshape(bs * nq, 4)

    tgt_lbl = jnp.concatenate([t['obj_labels'] for t in targets])
    tgt_verb = jnp.concatenate([t['verb_labels'] for t in targets])
    tsub = jnp.concatenate([t['sub_boxes'] for t in targets])
    tobj = jnp.concatenate([t['obj_boxes'] for t in targets])

    cost_obj_class = -obj_prob[:, tgt_lbl]
    pos_den = jnp.sum(tgt_verb, axis=-1)[None, :] + 1e-4
    neg_den = jnp.sum(1.0 - tgt_verb, axis=-1)[None, :] + 1e-4
    cost_verb_class = -((verb_prob @ tgt_verb.T) / pos_den
                        + ((1.0 - verb_prob) @ (1.0 - tgt_verb).T) / neg_den) / 2.0

    obj_nonzero = jnp.any(tobj != 0.0, axis=-1)[None, :]
    obj_allzero = jnp.all(tobj == 0.0, axis=-1)[None, :]
    cost_bbox = jnp.maximum(_cdist_l1_ref(sub, tsub),
                            _cdist_l1_ref(obj, tobj) * obj_nonzero.astype(jnp.float32))
    c_sub_giou = -_giou_ref(sub, tsub)
    c_obj_giou = -_giou_ref(obj, tobj) + c_sub_giou * obj_allzero.astype(jnp.float32)
    cost_giou = jnp.maximum(c_sub_giou, c_obj_giou)

    C = (w_obj * cost_obj_class + w_verb * cost_verb_class
         + w_bbox * cost_bbox + w_giou * cost_giou)
    return C.reshape(bs, nq, -1)


# ---------------------------------------------------------------------------
if __name__ == "__main__":
    key = jax.random.PRNGKey(0)
    bs, nq = 2, 8
    n_obj_cls, n_verb_cls = 12, 16
    sizes = [3, 3]                      # targets per image

    k = jax.random.split(key, 10)

    def rand_boxes(kk, n):
        cxy = jax.random.uniform(kk, (n, 2), jnp.float32, 0.3, 0.7)
        wh = jax.random.uniform(jax.random.fold_in(kk, 1), (n, 2),
                                jnp.float32, 0.1, 0.3)
        return jnp.concatenate([cxy, wh], axis=-1)

    outputs = {
        'pred_obj_logits': jax.random.normal(k[0], (bs, nq, n_obj_cls), jnp.float32),
        'pred_verb_logits': jax.random.normal(k[1], (bs, nq, n_verb_cls), jnp.float32),
        'pred_sub_boxes': rand_boxes(k[2], bs * nq).reshape(bs, nq, 4),
        'pred_obj_boxes': rand_boxes(k[3], bs * nq).reshape(bs, nq, 4),
    }

    targets = []
    for i, sz in enumerate(sizes):
        kk = jax.random.fold_in(k[4], i)
        obj_boxes = rand_boxes(jax.random.fold_in(kk, 2), sz)
        if i == 1:
            # exercise the "no object box" masking path
            obj_boxes = obj_boxes.at[0].set(jnp.zeros(4, jnp.float32))
        targets.append({
            'obj_labels': jax.random.randint(jax.random.fold_in(kk, 0),
                                             (sz,), 0, n_obj_cls),
            'verb_labels': jax.random.bernoulli(
                jax.random.fold_in(kk, 1), 0.3, (sz, n_verb_cls)).astype(jnp.float32),
            'sub_boxes': rand_boxes(jax.random.fold_in(kk, 3), sz),
            'obj_boxes': obj_boxes,
        })

    C = hungarian_matcher_hoi_cost(outputs, targets)
    C = jax.block_until_ready(C)

    C_ref = jax.block_until_ready(_reference_cost(outputs, targets))
    # Tolerance accounts for the bf16 class contraction (LHS probabilities and
    # folded per-column scales are rounded to bf16) plus the two approx
    # reciprocals in the GIoU path.
    np.testing.assert_allclose(np.asarray(C), np.asarray(C_ref),
                               rtol=1e-2, atol=1e-2)
    print("KERNEL_OK")
</pallas_src>

<mosaic_0001>
module attributes {stable_mosaic.version = 11 : i64} {
  func.func @_matcher_cost_kernel(%arg0: i32, %arg1: memref<8x128xf32, #tpu.memory_space<vmem>>, %arg2: memref<8x128xf32, #tpu.memory_space<vmem>>, %arg3: memref<8x32xf32, #tpu.memory_space<vmem>>, %arg4: memref<256x128xbf16, #tpu.memory_space<vmem>>, %arg5: memref<8x128xf32, #tpu.memory_space<vmem>>, %arg6: memref<16x128xf32, #tpu.memory_space<vmem>>, %arg7: memref<16x128xf32, #tpu.memory_space<vmem>>, %arg8: memref<8x128xf32, #tpu.memory_space<vmem>>) attributes {dimension_semantics = [#tpu.dimension_semantics<parallel>], iteration_bounds = array<i64: 2>, scalar_prefetch = 0 : i64, scratch_operands = 0 : i64, tpu.core_type = #tpu.core_type<tc>, window_params = [{transform_indices = @transform_0, window_bounds = array<i64: 8, 128>}, {transform_indices = @transform_1, window_bounds = array<i64: 8, 128>}, {transform_indices = @transform_2, window_bounds = array<i64: 8, 32>}, {pipeline_mode = #tpu.pipeline_mode<synchronous>, transform_indices = @transform_3, window_bounds = array<i64: 256, 128>}, {pipeline_mode = #tpu.pipeline_mode<synchronous>, transform_indices = @transform_4, window_bounds = array<i64: 8, 128>}, {pipeline_mode = #tpu.pipeline_mode<synchronous>, transform_indices = @transform_5, window_bounds = array<i64: 16, 128>}, {pipeline_mode = #tpu.pipeline_mode<synchronous>, transform_indices = @transform_6, window_bounds = array<i64: 16, 128>}, {transform_indices = @transform_7, window_bounds = array<i64: 8, 128>}]} {
    %c0 = arith.constant 0 : index
    %c0_0 = arith.constant 0 : index
    %0 = vector.load %arg1[%c0, %c0_0] : memref<8x128xf32, #tpu.memory_space<vmem>>, vector<8x128xf32>
    %cst = arith.constant dense<0xFF800000> : vector<8xf32>
    %1 = vector.multi_reduction <maximumf>, %0, %cst [1] : vector<8x128xf32> to vector<8xf32>
    %2 = vector.shape_cast %1 : vector<8xf32> to vector<8x1xf32>
    %3 = vector.broadcast %2 : vector<8x1xf32> to vector<8x128xf32>
    %4 = arith.subf %0, %3 : vector<8x128xf32>
    %5 = math.exp %4 : vector<8x128xf32>
    %cst_1 = arith.constant dense<0.000000e+00> : vector<8xf32>
    %6 = vector.multi_reduction <add>, %5, %cst_1 [1] : vector<8x128xf32> to vector<8xf32>
    %7 = vector.shape_cast %6 : vector<8xf32> to vector<8x1xf32>
    %cst_2 = arith.constant 1.000000e+00 : f32
    %8 = vector.broadcast %cst_2 : f32 to vector<8x1xf32>
    %9 = arith.divf %8, %7 : vector<8x1xf32>
    %10 = vector.broadcast %9 : vector<8x1xf32> to vector<8x128xf32>
    %11 = arith.mulf %5, %10 : vector<8x128xf32>
    %c0_3 = arith.constant 0 : index
    %c0_4 = arith.constant 0 : index
    %12 = vector.load %arg2[%c0_3, %c0_4] : memref<8x128xf32, #tpu.memory_space<vmem>>, vector<8x128xf32>
    %13 = arith.negf %12 : vector<8x128xf32>
    %14 = math.exp %13 : vector<8x128xf32>
    %cst_5 = arith.constant 1.000000e+00 : f32
    %15 = vector.broadcast %cst_5 : f32 to vector<8x128xf32>
    %16 = arith.addf %15, %14 : vector<8x128xf32>
    %17 = arith.divf %15, %16 : vector<8x128xf32>
    %cst_6 = arith.constant dense<0.000000e+00> : vector<8xf32>
    %18 = vector.multi_reduction <add>, %17, %cst_6 [1] : vector<8x128xf32> to vector<8xf32>
    %19 = vector.shape_cast %18 : vector<8xf32> to vector<8x1xf32>
    %20 = tpu.concatenate %11, %17 in 1 : vector<8x128xf32>, vector<8x128xf32> -> vector<8x256xf32>
    %21 = arith.truncf %20 : vector<8x256xf32> to vector<8x256xbf16>
    %c0_7 = arith.constant 0 : index
    %c0_8 = arith.constant 0 : index
    %22 = vector.load %arg4[%c0_7, %c0_8] : memref<256x128xbf16, #tpu.memory_space<vmem>>, vector<256x128xbf16>
    %cst_9 = arith.constant dense<0.000000e+00> : vector<8x128xf32>
    %23 = tpu.matmul %21, %22, %cst_9 {dimension_numbers = #tpu.dot_dimension_numbers<[1], [0], [0], [1], [0, 0, 1, 1], [], []>} : vector<8x256xbf16>, vector<256x128xbf16>, vector<8x128xf32> -> vector<8x128xf32>
    %c0_10 = arith.constant 0 : index
    %c0_11 = arith.constant 0 : index
    %24 = vector.load %arg5[%c0_10, %c0_11] : memref<8x128xf32, #tpu.memory_space<vmem>>, vector<1x128xf32>
    %c1 = arith.constant 1 : index
    %c0_12 = arith.constant 0 : index
    %25 = vector.load %arg5[%c1, %c0_12] : memref<8x128xf32, #tpu.memory_space<vmem>>, vector<1x128xf32>
    %26 = vector.broadcast %25 : vector<1x128xf32> to vector<8x128xf32>
    %27 = vector.broadcast %19 : vector<8x1xf32> to vector<8x128xf32>
    %28 = arith.mulf %26, %27 : vector<8x128xf32>
    %29 = vector.broadcast %24 : vector<1x128xf32> to vector<8x128xf32>
    %30 = arith.addf %29, %28 : vector<8x128xf32>
    %31 = arith.addf %23, %30 : vector<8x128xf32>
    %c0_13 = arith.constant 0 : index
    %c0_14 = arith.constant 0 : index
    %32 = vector.load %arg3[%c0_13, %c0_14] : memref<8x32xf32, #tpu.memory_space<vmem>>, vector<8x32xf32>
    %c0_15 = arith.constant 0 : index
    %c0_16 = arith.constant 0 : index
    %33 = vector.load %arg6[%c0_15, %c0_16] : memref<16x128xf32, #tpu.memory_space<vmem>>, vector<16x128xf32>
    %c0_17 = arith.constant 0 : index
    %c0_18 = arith.constant 0 : index
    %34 = vector.load %arg7[%c0_17, %c0_18] : memref<16x128xf32, #tpu.memory_space<vmem>>, vector<16x128xf32>
    %35 = vector.extract_strided_slice %34 {offsets = [9, 0], sizes = [1, 128], strides = [1, 1]} : vector<16x128xf32> to vector<1x128xf32>
    %36 = vector.extract_strided_slice %34 {offsets = [10, 0], sizes = [1, 128], strides = [1, 1]} : vector<16x128xf32> to vector<1x128xf32>
    %37 = vector.extract_strided_slice %32 {offsets = [0, 0], sizes = [8, 1], strides = [1, 1]} : vector<8x32xf32> to vector<8x1xf32>
    %38 = vector.extract_strided_slice %33 {offsets = [0, 0], sizes = [1, 128], strides = [1, 1]} : vector<16x128xf32> to vector<1x128xf32>
    %39 = vector.broadcast %37 : vector<8x1xf32> to vector<8x128xf32>
    %40 = vector.broadcast %38 : vector<1x128xf32> to vector<8x128xf32>
    %41 = arith.subf %39, %40 : vector<8x128xf32>
    %42 = math.absf %41 : vector<8x128xf32>
    %43 = vector.extract_strided_slice %32 {offsets = [0, 1], sizes = [8, 1], strides = [1, 1]} : vector<8x32xf32> to vector<8x1xf32>
    %44 = vector.extract_strided_slice %33 {offsets = [1, 0], sizes = [1, 128], strides = [1, 1]} : vector<16x128xf32> to vector<1x128xf32>
    %45 = vector.broadcast %43 : vector<8x1xf32> to vector<8x128xf32>
    %46 = vector.broadcast %44 : vector<1x128xf32> to vector<8x128xf32>
    %47 = arith.subf %45, %46 : vector<8x128xf32>
    %48 = math.absf %47 : vector<8x128xf32>
    %49 = arith.addf %42, %48 : vector<8x128xf32>
    %50 = vector.extract_strided_slice %32 {offsets = [0, 2], sizes = [8, 1], strides = [1, 1]} : vector<8x32xf32> to vector<8x1xf32>
    %51 = vector.extract_strided_slice %33 {offsets = [2, 0], sizes = [1, 128], strides = [1, 1]} : vector<16x128xf32> to vector<1x128xf32>
    %52 = vector.broadcast %50 : vector<8x1xf32> to vector<8x128xf32>
    %53 = vector.broadcast %51 : vector<1x128xf32> to vector<8x128xf32>
    %54 = arith.subf %52, %53 : vector<8x128xf32>
    %55 = math.absf %54 : vector<8x128xf32>
    %56 = arith.addf %49, %55 : vector<8x128xf32>
    %57 = vector.extract_strided_slice %32 {offsets = [0, 3], sizes = [8, 1], strides = [1, 1]} : vector<8x32xf32> to vector<8x1xf32>
    %58 = vector.extract_strided_slice %33 {offsets = [3, 0], sizes = [1, 128], strides = [1, 1]} : vector<16x128xf32> to vector<1x128xf32>
    %59 = vector.broadcast %57 : vector<8x1xf32> to vector<8x128xf32>
    %60 = vector.broadcast %58 : vector<1x128xf32> to vector<8x128xf32>
    %61 = arith.subf %59, %60 : vector<8x128xf32>
    %62 = math.absf %61 : vector<8x128xf32>
    %63 = arith.addf %56, %62 : vector<8x128xf32>
    %64 = vector.extract_strided_slice %32 {offsets = [0, 16], sizes = [8, 1], strides = [1, 1]} : vector<8x32xf32> to vector<8x1xf32>
    %65 = vector.extract_strided_slice %34 {offsets = [0, 0], sizes = [1, 128], strides = [1, 1]} : vector<16x128xf32> to vector<1x128xf32>
    %66 = vector.broadcast %64 : vector<8x1xf32> to vector<8x128xf32>
    %67 = vector.broadcast %65 : vector<1x128xf32> to vector<8x128xf32>
    %68 = arith.subf %66, %67 : vector<8x128xf32>
    %69 = math.absf %68 : vector<8x128xf32>
    %70 = vector.extract_strided_slice %32 {offsets = [0, 17], sizes = [8, 1], strides = [1, 1]} : vector<8x32xf32> to vector<8x1xf32>
    %71 = vector.extract_strided_slice %34 {offsets = [1, 0], sizes = [1, 128], strides = [1, 1]} : vector<16x128xf32> to vector<1x128xf32>
    %72 = vector.broadcast %70 : vector<8x1xf32> to vector<8x128xf32>
    %73 = vector.broadcast %71 : vector<1x128xf32> to vector<8x128xf32>
    %74 = arith.subf %72, %73 : vector<8x128xf32>
    %75 = math.absf %74 : vector<8x128xf32>
    %76 = arith.addf %69, %75 : vector<8x128xf32>
    %77 = vector.extract_strided_slice %32 {offsets = [0, 18], sizes = [8, 1], strides = [1, 1]} : vector<8x32xf32> to vector<8x1xf32>
    %78 = vector.extract_strided_slice %34 {offsets = [2, 0], sizes = [1, 128], strides = [1, 1]} : vector<16x128xf32> to vector<1x128xf32>
    %79 = vector.broadcast %77 : vector<8x1xf32> to vector<8x128xf32>
    %80 = vector.broadcast %78 : vector<1x128xf32> to vector<8x128xf32>
    %81 = arith.subf %79, %80 : vector<8x128xf32>
    %82 = math.absf %81 : vector<8x128xf32>
    %83 = arith.addf %76, %82 : vector<8x128xf32>
    %84 = vector.extract_strided_slice %32 {offsets = [0, 19], sizes = [8, 1], strides = [1, 1]} : vector<8x32xf32> to vector<8x1xf32>
    %85 = vector.extract_strided_slice %34 {offsets = [3, 0], sizes = [1, 128], strides = [1, 1]} : vector<16x128xf32> to vector<1x128xf32>
    %86 = vector.broadcast %84 : vector<8x1xf32> to vector<8x128xf32>
    %87 = vector.broadcast %85 : vector<1x128xf32> to vector<8x128xf32>
    %88 = arith.subf %86, %87 : vector<8x128xf32>
    %89 = math.absf %88 : vector<8x128xf32>
    %90 = arith.addf %83, %89 : vector<8x128xf32>
    %91 = vector.broadcast %35 : vector<1x128xf32> to vector<8x128xf32>
    %92 = arith.mulf %90, %91 : vector<8x128xf32>
    %93 = arith.maximumf %63, %92 : vector<8x128xf32>
    %cst_19 = arith.constant 1.000000e+00 : f32
    %94 = vector.broadcast %cst_19 : f32 to vector<8x128xf32>
    %95 = arith.mulf %94, %93 : vector<8x128xf32>
    %96 = arith.addf %31, %95 : vector<8x128xf32>
    %97 = vector.extract_strided_slice %32 {offsets = [0, 4], sizes = [8, 1], strides = [1, 1]} : vector<8x32xf32> to vector<8x1xf32>
    %98 = vector.extract_strided_slice %32 {offsets = [0, 5], sizes = [8, 1], strides = [1, 1]} : vector<8x32xf32> to vector<8x1xf32>
    %99 = vector.extract_strided_slice %32 {offsets = [0, 6], sizes = [8, 1], strides = [1, 1]} : vector<8x32xf32> to vector<8x1xf32>
    %100 = vector.extract_strided_slice %32 {offsets = [0, 7], sizes = [8, 1], strides = [1, 1]} : vector<8x32xf32> to vector<8x1xf32>
    %101 = vector.extract_strided_slice %32 {offsets = [0, 8], sizes = [8, 1], strides = [1, 1]} : vector<8x32xf32> to vector<8x1xf32>
    %102 = vector.extract_strided_slice %33 {offsets = [4, 0], sizes = [1, 128], strides = [1, 1]} : vector<16x128xf32> to vector<1x128xf32>
    %103 = vector.extract_strided_slice %33 {offsets = [5, 0], sizes = [1, 128], strides = [1, 1]} : vector<16x128xf32> to vector<1x128xf32>
    %104 = vector.extract_strided_slice %33 {offsets = [6, 0], sizes = [1, 128], strides = [1, 1]} : vector<16x128xf32> to vector<1x128xf32>
    %105 = vector.extract_strided_slice %33 {offsets = [7, 0], sizes = [1, 128], strides = [1, 1]} : vector<16x128xf32> to vector<1x128xf32>
    %106 = vector.extract_strided_slice %33 {offsets = [8, 0], sizes = [1, 128], strides = [1, 1]} : vector<16x128xf32> to vector<1x128xf32>
    %107 = vector.broadcast %99 : vector<8x1xf32> to vector<8x128xf32>
    %108 = vector.broadcast %104 : vector<1x128xf32> to vector<8x128xf32>
    %109 = arith.minimumf %107, %108 : vector<8x128xf32>
    %110 = vector.broadcast %97 : vector<8x1xf32> to vector<8x128xf32>
    %111 = vector.broadcast %102 : vector<1x128xf32> to vector<8x128xf32>
    %112 = arith.maximumf %110, %111 : vector<8x128xf32>
    %113 = arith.subf %109, %112 : vector<8x128xf32>
    %cst_20 = arith.constant 0.000000e+00 : f32
    %114 = vector.broadcast %cst_20 : f32 to vector<8x128xf32>
    %115 = arith.maximumf %113, %114 : vector<8x128xf32>
    %116 = vector.broadcast %100 : vector<8x1xf32> to vector<8x128xf32>
    %117 = vector.broadcast %105 : vector<1x128xf32> to vector<8x128xf32>
    %118 = arith.minimumf %116, %117 : vector<8x128xf32>
    %119 = vector.broadcast %98 : vector<8x1xf32> to vector<8x128xf32>
    %120 = vector.broadcast %103 : vector<1x128xf32> to vector<8x128xf32>
    %121 = arith.maximumf %119, %120 : vector<8x128xf32>
    %122 = arith.subf %118, %121 : vector<8x128xf32>
    %cst_21 = arith.constant 0.000000e+00 : f32
    %123 = vector.broadcast %cst_21 : f32 to vector<8x128xf32>
    %124 = arith.maximumf %122, %123 : vector<8x128xf32>
    %125 = arith.mulf %115, %124 : vector<8x128xf32>
    %126 = vector.broadcast %101 : vector<8x1xf32> to vector<8x128xf32>
    %127 = vector.broadcast %106 : vector<1x128xf32> to vector<8x128xf32>
    %128 = arith.addf %126, %127 : vector<8x128xf32>
    %129 = arith.subf %128, %125 : vector<8x128xf32>
    %130 = vector.broadcast %99 : vector<8x1xf32> to vector<8x128xf32>
    %131 = vector.broadcast %104 : vector<1x128xf32> to vector<8x128xf32>
    %132 = arith.maximumf %130, %131 : vector<8x128xf32>
    %133 = vector.broadcast %97 : vector<8x1xf32> to vector<8x128xf32>
    %134 = vector.broadcast %102 : vector<1x128xf32> to vector<8x128xf32>
    %135 = arith.minimumf %133, %134 : vector<8x128xf32>
    %136 = arith.subf %132, %135 : vector<8x128xf32>
    %137 = vector.broadcast %100 : vector<8x1xf32> to vector<8x128xf32>
    %138 = vector.broadcast %105 : vector<1x128xf32> to vector<8x128xf32>
    %139 = arith.maximumf %137, %138 : vector<8x128xf32>
    %140 = vector.broadcast %98 : vector<8x1xf32> to vector<8x128xf32>
    %141 = vector.broadcast %103 : vector<1x128xf32> to vector<8x128xf32>
    %142 = arith.minimumf %140, %141 : vector<8x128xf32>
    %143 = arith.subf %139, %142 : vector<8x128xf32>
    %144 = arith.mulf %136, %143 : vector<8x128xf32>
    %145 = arith.mulf %125, %144 : vector<8x128xf32>
    %146 = arith.subf %144, %129 : vector<8x128xf32>
    %147 = arith.mulf %146, %129 : vector<8x128xf32>
    %148 = arith.subf %145, %147 : vector<8x128xf32>
    %149 = arith.mulf %129, %144 : vector<8x128xf32>
    %150 = tpu.reciprocal %149 {approx = true} : vector<8x128xf32> -> vector<8x128xf32>
    %151 = arith.mulf %148, %150 : vector<8x128xf32>
    %cst_22 = arith.constant 0.000000e+00 : f32
    %152 = vector.broadcast %cst_22 : f32 to vector<8x128xf32>
    %153 = arith.subf %152, %151 : vector<8x128xf32>
    %154 = vector.extract_strided_slice %32 {offsets = [0, 20], sizes = [8, 1], strides = [1, 1]} : vector<8x32xf32> to vector<8x1xf32>
    %155 = vector.extract_strided_slice %32 {offsets = [0, 21], sizes = [8, 1], strides = [1, 1]} : vector<8x32xf32> to vector<8x1xf32>
    %156 = vector.extract_strided_slice %32 {offsets = [0, 22], sizes = [8, 1], strides = [1, 1]} : vector<8x32xf32> to vector<8x1xf32>
    %157 = vector.extract_strided_slice %32 {offsets = [0, 23], sizes = [8, 1], strides = [1, 1]} : vector<8x32xf32> to vector<8x1xf32>
    %158 = vector.extract_strided_slice %32 {offsets = [0, 24], sizes = [8, 1], strides = [1, 1]} : vector<8x32xf32> to vector<8x1xf32>
    %159 = vector.extract_strided_slice %34 {offsets = [4, 0], sizes = [1, 128], strides = [1, 1]} : vector<16x128xf32> to vector<1x128xf32>
    %160 = vector.extract_strided_slice %34 {offsets = [5, 0], sizes = [1, 128], strides = [1, 1]} : vector<16x128xf32> to vector<1x128xf32>
    %161 = vector.extract_strided_slice %34 {offsets = [6, 0], sizes = [1, 128], strides = [1, 1]} : vector<16x128xf32> to vector<1x128xf32>
    %162 = vector.extract_strided_slice %34 {offsets = [7, 0], sizes = [1, 128], strides = [1, 1]} : vector<16x128xf32> to vector<1x128xf32>
    %163 = vector.extract_strided_slice %34 {offsets = [8, 0], sizes = [1, 128], strides = [1, 1]} : vector<16x128xf32> to vector<1x128xf32>
    %164 = vector.broadcast %156 : vector<8x1xf32> to vector<8x128xf32>
    %165 = vector.broadcast %161 : vector<1x128xf32> to vector<8x128xf32>
    %166 = arith.minimumf %164, %165 : vector<8x128xf32>
    %167 = vector.broadcast %154 : vector<8x1xf32> to vector<8x128xf32>
    %168 = vector.broadcast %159 : vector<1x128xf32> to vector<8x128xf32>
    %169 = arith.maximumf %167, %168 : vector<8x128xf32>
    %170 = arith.subf %166, %169 : vector<8x128xf32>
    %cst_23 = arith.constant 0.000000e+00 : f32
    %171 = vector.broadcast %cst_23 : f32 to vector<8x128xf32>
    %172 = arith.maximumf %170, %171 : vector<8x128xf32>
    %173 = vector.broadcast %157 : vector<8x1xf32> to vector<8x128xf32>
    %174 = vector.broadcast %162 : vector<1x128xf32> to vector<8x128xf32>
    %175 = arith.minimumf %173, %174 : vector<8x128xf32>
    %176 = vector.broadcast %155 : vector<8x1xf32> to vector<8x128xf32>
    %177 = vector.broadcast %160 : vector<1x128xf32> to vector<8x128xf32>
    %178 = arith.maximumf %176, %177 : vector<8x128xf32>
    %179 = arith.subf %175, %178 : vector<8x128xf32>
    %cst_24 = arith.constant 0.000000e+00 : f32
    %180 = vector.broadcast %cst_24 : f32 to vector<8x128xf32>
    %181 = arith.maximumf %179, %180 : vector<8x128xf32>
    %182 = arith.mulf %172, %181 : vector<8x128xf32>
    %183 = vector.broadcast %158 : vector<8x1xf32> to vector<8x128xf32>
    %184 = vector.broadcast %163 : vector<1x128xf32> to vector<8x128xf32>
    %185 = arith.addf %183, %184 : vector<8x128xf32>
    %186 = arith.subf %185, %182 : vector<8x128xf32>
    %187 = vector.broadcast %156 : vector<8x1xf32> to vector<8x128xf32>
    %188 = vector.broadcast %161 : vector<1x128xf32> to vector<8x128xf32>
    %189 = arith.maximumf %187, %188 : vector<8x128xf32>
    %190 = vector.broadcast %154 : vector<8x1xf32> to vector<8x128xf32>
    %191 = vector.broadcast %159 : vector<1x128xf32> to vector<8x128xf32>
    %192 = arith.minimumf %190, %191 : vector<8x128xf32>
    %193 = arith.subf %189, %192 : vector<8x128xf32>
    %194 = vector.broadcast %157 : vector<8x1xf32> to vector<8x128xf32>
    %195 = vector.broadcast %162 : vector<1x128xf32> to vector<8x128xf32>
    %196 = arith.maximumf %194, %195 : vector<8x128xf32>
    %197 = vector.broadcast %155 : vector<8x1xf32> to vector<8x128xf32>
    %198 = vector.broadcast %160 : vector<1x128xf32> to vector<8x128xf32>
    %199 = arith.minimumf %197, %198 : vector<8x128xf32>
    %200 = arith.subf %196, %199 : vector<8x128xf32>
    %201 = arith.mulf %193, %200 : vector<8x128xf32>
    %202 = arith.mulf %182, %201 : vector<8x128xf32>
    %203 = arith.subf %201, %186 : vector<8x128xf32>
    %204 = arith.mulf %203, %186 : vector<8x128xf32>
    %205 = arith.subf %202, %204 : vector<8x128xf32>
    %206 = arith.mulf %186, %201 : vector<8x128xf32>
    %207 = tpu.reciprocal %206 {approx = true} : vector<8x128xf32> -> vector<8x128xf32>
    %208 = arith.mulf %205, %207 : vector<8x128xf32>
    %cst_25 = arith.constant 0.000000e+00 : f32
    %209 = vector.broadcast %cst_25 : f32 to vector<8x128xf32>
    %210 = arith.subf %209, %208 : vector<8x128xf32>
    %211 = vector.broadcast %36 : vector<1x128xf32> to vector<8x128xf32>
    %212 = arith.mulf %153, %211 : vector<8x128xf32>
    %213 = arith.addf %210, %212 : vector<8x128xf32>
    %214 = arith.maximumf %153, %213 : vector<8x128xf32>
    %cst_26 = arith.constant 1.000000e+00 : f32
    %215 = vector.broadcast %cst_26 : f32 to vector<8x128xf32>
    %216 = arith.mulf %215, %214 : vector<8x128xf32>
    %217 = arith.addf %96, %216 : vector<8x128xf32>
    %c0_27 = arith.constant 0 : index
    %c0_28 = arith.constant 0 : index
    %218 = vector.load %arg8[%c0_27, %c0_28] : memref<8x128xf32, #tpu.memory_space<vmem>>, vector<8x128xf32>
    tpu.vector_store %arg8[%c0_27, %c0_28], %217 {strides = array<i32>} : memref<8x128xf32, #tpu.memory_space<vmem>>, vector<8x128xf32>,
    return
  }
  func.func @transform_0(%arg0: i32) -> (i32, i32) {
    %c0_i32 = arith.constant 0 : i32
    %c0_i32_0 = arith.constant 0 : i32
    return %arg0, %c0_i32 : i32, i32
  }
  func.func @transform_1(%arg0: i32) -> (i32, i32) {
    %c0_i32 = arith.constant 0 : i32
    %c0_i32_0 = arith.constant 0 : i32
    return %arg0, %c0_i32 : i32, i32
  }
  func.func @transform_2(%arg0: i32) -> (i32, i32) {
    %c0_i32 = arith.constant 0 : i32
    %c0_i32_0 = arith.constant 0 : i32
    return %arg0, %c0_i32 : i32, i32
  }
  func.func @transform_3(%arg0: i32) -> (i32, i32) {
    %c0_i32 = arith.constant 0 : i32
    %c0_i32_0 = arith.constant 0 : i32
    %c0_i32_1 = arith.constant 0 : i32
    return %c0_i32, %c0_i32_0 : i32, i32
  }
  func.func @transform_4(%arg0: i32) -> (i32, i32) {
    %c0_i32 = arith.constant 0 : i32
    %c0_i32_0 = arith.constant 0 : i32
    %c0_i32_1 = arith.constant 0 : i32
    return %c0_i32, %c0_i32_0 : i32, i32
  }
  func.func @transform_5(%arg0: i32) -> (i32, i32) {
    %c0_i32 = arith.constant 0 : i32
    %c0_i32_0 = arith.constant 0 : i32
    %c0_i32_1 = arith.constant 0 : i32
    return %c0_i32, %c0_i32_0 : i32, i32
  }
  func.func @transform_6(%arg0: i32) -> (i32, i32) {
    %c0_i32 = arith.constant 0 : i32
    %c0_i32_0 = arith.constant 0 : i32
    %c0_i32_1 = arith.constant 0 : i32
    return %c0_i32, %c0_i32_0 : i32, i32
  }
  func.func @transform_7(%arg0: i32) -> (i32, i32) {
    %c0_i32 = arith.constant 0 : i32
    %c0_i32_0 = arith.constant 0 : i32
    return %arg0, %c0_i32 : i32, i32
  }
}

</mosaic_0001>

<bundles_post_ra>
// kernel: tpu_custom_call.1
= control target key start
LH: loop header
LB: loop body
LE: loop exit
PB: predicated region body
PF: predicated region fallthrough
CT: control target
= control target key end

     0   :  { %s1908_s0 = inlined_call_operand.hbm [shape: f32[16,128], index: 0, kind: input, shape index: {}]   ;;  %s1909_s1 = inlined_call_operand.hbm [shape: f32[16,128], index: 1, kind: input, shape index: {}]   ;;  %s1910_s2 = inlined_call_operand.hbm [shape: f32[16,32], index: 2, kind: input, shape index: {}]   ;;  %s1911_s3 = inlined_call_operand.hbm [shape: bf16[256,128], index: 3, kind: input, shape index: {}]   ;;  %s1912_s4 = inlined_call_operand.hbm [shape: f32[8,128], index: 4, kind: input, shape index: {}]   ;;  %s1913_s5 = inlined_call_operand.hbm [shape: f32[16,128], index: 5, kind: input, shape index: {}]   ;;  %s1914_s6 = inlined_call_operand.hbm [shape: f32[16,128], index: 6, kind: input, shape index: {}]   ;;  %s1915_s7 = inlined_call_operand.hbm [shape: f32[16,128], index: 7, kind: output, shape index: {}]  }
   0x1   :  { %1923 = sst [smem:[#allocation23_spill]] %s1909_s1 }
   0x2   :  { %1924 = sst [smem:[#allocation24_spill]] %s1911_s3 }
   0x3   :  { %1925 = sst [smem:[#allocation25_spill]] %s1912_s4 }
   0x4   :  { %1926 = sst [smem:[#allocation26_spill]] %s1913_s5 }
   0x5   :  { %12 = vsyncpa [#allocation3], 0 }
   0x6   :  { %14 = vsyncpa [#allocation3 + $0x1], 0 }
   0x7   :  { %15 = vsyncpa [#allocation6], 0 }
   0x8   :  { %17 = vsyncpa [#allocation6 + $0x1], 0 }
   0x9   :  { %18 = vsyncpa [#allocation9], 0 }
   0xa   :  { %19 = vsyncpa [#allocation12], 0 }
   0xb   :  { %20 = vsyncpa [#allocation4], 0 }
   0xc   :  { %22 = vsyncpa [#allocation4 + $0x1], 0  ;;  %s1605_s24 = smov 0   ;;  %s1607_s25 = smov 0  }
   0xd   :  { %s1609_s26 = smov 0   ;;  %s1611_s27 = smov 0  }
   0xe LB: > { %1927 = sst [smem:[#allocation20_spill]] %s1537_s27  ;;  %s1629_s8 = sadd.s32 4294967295, %s1537_s27   ;;  %s1537_s27 = sphi %s1611_s27, %s1949_s27   ;;  %s1533_s26 = sphi %s1609_s26, %s1953_s26   ;;  %s1529_s25 = sphi %s1607_s25, %s1952_s25   ;;  %s1525_s24 = sphi %s1605_s24, %s1951_s24  }
   0xf   : > { %s1928_s3 = sld [smem:[#allocation24_spill]]  ;;  %p991_p0 = scmp.ge.s32.totalorder %s1537_s27, 1 }
  0x10   : > { %p1919_p1 = scmp.eq.s32.totalorder %s1629_s8, 0  ;;  %p221_p2 = scmp.lt.s32.totalorder %s1537_s27, 3 }
  0x11   : > { %s1539_s10 = smov [#allocation8]   ;;  %s1930_s5 = sld [smem:[#allocation26_spill]] }
  0x12   : > { %p1634_p3 = pnand %p991_p0, %p221_p2  ;;  %s234_s11 = sshll.u32 %s1539_s10, 4  ;;  %s235_s11 = int_to_ptr.vmem [resolvable:$true] %s234_s11 }
  0x13   : > { %s1540_s16 = smov [#allocation11]   ;;  %s1541_s18 = smov 64  }
  0x14   : > { %p1121_p4 = pneg %p1634_p3  ;;  %s260_s17 = sshll.u32 %s1540_s16, 4  ;;  %s261_s17 = int_to_ptr.vmem [resolvable:$true] %s260_s17 }
  0x15   : > { %s232_s30 = sshll.u32 %s1928_s3, 4  ;;  %s1542_s19 = smov 4   ;;  %s233_s30 = int_to_ptr.hbm [resolvable:$true] %s232_s30 }
  0x16   : > { %p1646_p6 = pnand %p1121_p4, %p1919_p1  ;;  %s1916_s20 = smov 128  }
  0x17   : > { %s258_s14 = sshll.u32 %s1930_s5, 4  ;;  %s1917_s21 = smov 8   ;;  %s259_s14 = int_to_ptr.hbm [resolvable:$true] %s258_s14 }
  0x18   : > { %1124 = dma.hbm_to_vmem [thread:$0]  (!%p1646_p6), %s233_s30, 2048, %s235_s11, [#allocation9], %s1541_s18, %s1541_s18, %s1542_s19  }
  0x19   : > { %1130 = dma.hbm_to_vmem [thread:$0]  (!%p1646_p6), %s259_s14, 256, %s261_s17, [#allocation12], %s1916_s20, %s1916_s20, %s1917_s21  }
  0x1a   : > { %s990_s22 = sadd.s32 4294967294, %s1537_s27   ;;  %s1659_s23 = sadd.s32 1, %s1537_s27  }
  0x1b   : > { %1932 = sst [smem:[#allocation21_spill]] %s1659_s23  ;;  %s32_s28 = ssub.s32 %s1537_s27, %s1659_s23 }
  0x1c   : > { %s35_s29 = sadd.s32 1, %s1533_s26  ;;  %p33_p7 = scmp.eq.s32.totalorder %s32_s28, 0 }
  0x1d   : > { %p42_p8 = scmp.ne.s32.totalorder %s1533_s26, %s1529_s25  ;;  %p43_p9 = scmp.eq.s32.totalorder %s1537_s27, 0 }
  0x1e   : > { %p48_p10 = scmp.ne.s32.totalorder %s1529_s25, %s1525_s24  ;;  %p208_p13 = scmp.eq.s32.totalorder %s1629_s8, 1 }
  0x1f   : > { %s1670_s30 = scalar_select %p33_p7, %s1533_s26, %s35_s29  }
  0x20   : > { %p44_p11 = por %p43_p9, %p42_p8  ;;  %p1674_p12 = por %p1919_p1, %p48_p10 }
  0x21   : > { %1933 = sst [smem:[#allocation22_spill]] %s1670_s30  ;;  %p214_p0 = scmp.eq.s32.totalorder %s990_s22, 1 }
  0x22   : > { %p1152_p2 = scmp.lt.s32.totalorder %s1537_s27, 2  ;;  %s1918_s11 = sand.u32 1, %s1533_s26  }
  0x23   : > { %p1681_p4 = por %p208_p13, %p42_p8  ;;  %p1685_p5 = por %p214_p0, %p48_p10 }
  0x24   : > { %s1691_s14 = sshll.u32 %s1918_s11, 3  ;;  %s1694_s16 = sshll.u32 %s1537_s27, 3 }
  0x25   : > { %p1696_p7 = pnand %p1152_p2, %p44_p11  ;;  %s307_s18 = sand.u32 1, %s1537_s27  }
  0x26   : > { %s1938_s1 = sld [smem:[#allocation23_spill]]  ;;  %s311_s20 = scalar_lea.vmem [#allocation5], %s1691_s14 }
  0x27   : > { %s319_s21 = sshll.u32 %s311_s20, 4  ;;  %s1706_s11 = scalar_lea.sflag [#allocation6], %s307_s18  ;;  %s320_s21 = int_to_ptr.vmem [resolvable:$true] %s319_s21 }
  0x28   : > { %p1313_p9 = pneg %p1696_p7 }
  0x2c   : > { %s315_s28 = scalar_lea.hbm %s1938_s1, %s1694_s16  ;;  %s1316_s22 = scalar_lea.hbm %s1938_s1, 16 }
  0x2d   : > { %s317_s29 = sshll.u32 %s315_s28, 4  ;;  %s318_s29 = int_to_ptr.hbm [resolvable:$true] %s317_s29 }
  0x2e   : > { %s1309_s3 = sshra.s32 %s318_s29, 4  ;;  %s1310_s3 = int_to_ptr.hbm [resolvable:$true] %s1309_s3 }
  0x2f   : > { %s1311_s5 = scalar_lea.hbm %s1310_s3, 8  ;;  %p1317_p13 = scmp.lt.s32.totalorder %s1310_s3, %s1938_s1 }
  0x30   : > { %p1312_p8 = scmp.ne.s32.totalorder %s1310_s3, %s1311_s5  ;;  %p1318_p0 = scmp.lt.s32.totalorder %s1316_s22, %s1311_s5 }
  0x32   : > { %p1314_p10 = pnand %p1313_p9, %p1312_p8  ;;  %p1319_p2 = por %p1318_p0, %p1317_p13 }
  0x34   : > { %p1315_p11 = pneg %p1314_p10 }
  0x36   : > { %p1320_p1 = pnand %p1319_p2, %p1315_p11 }
  0x38   : > { %1323 = shalt.err (!%p1320_p1)
}
  0x39   : > { %1140 = dma.hbm_to_vmem [thread:$0]  (!%p1696_p7), %s318_s29, 128, %s320_s21, %s1706_s11  }
  0x3a   : > { %s1939_s4 = sld [smem:[#allocation25_spill]]  ;;  %s1545_s19 = smov [#allocation10]  }
  0x3b   : > { %s249_s3 = sshll.u32 %s1545_s19, 4  ;;  %s272_s28 = sshll.u32 %s1914_s6, 4  ;;  %s250_s3 = int_to_ptr.vmem [resolvable:$true] %s249_s3  ;;  %s273_s28 = int_to_ptr.hbm [resolvable:$true] %s272_s28 }
  0x3c   : > { %s1546_s20 = smov [#allocation13]   ;;  %s1940_s21 = smov 8  }
  0x3d   : > { %s274_s1 = sshll.u32 %s1546_s20, 4  ;;  %s1941_s23 = smov 128   ;;  %s275_s1 = int_to_ptr.vmem [resolvable:$true] %s274_s1 }
  0x3e   : > { %1133 = dma.hbm_to_vmem [thread:$0]  (!%p1646_p6), %s273_s28, 256, %s275_s1, [#allocation12], %s1941_s23, %s1941_s23, %s1940_s21  }
  0x3f   : > { %s296_s19 = scalar_lea.hbm %s1908_s0, %s1694_s16  ;;  %s1406_s28 = scalar_lea.hbm %s1908_s0, 16 }
  0x40   : > { %s247_s30 = sshll.u32 %s1939_s4, 4  ;;  %s292_s4 = scalar_lea.vmem [#allocation2], %s1691_s14  ;;  %s248_s30 = int_to_ptr.hbm [resolvable:$true] %s247_s30 }
  0x41   : > { %1127 = dma.hbm_to_vmem [thread:$0]  (!%p1646_p6), %s248_s30, 128, %s250_s3, [#allocation9]  }
  0x42   : > { %s300_s27 = sshll.u32 %s292_s4, 4  ;;  %s298_s5 = sshll.u32 %s296_s19, 4  ;;  %s301_s27 = int_to_ptr.vmem [resolvable:$true] %s300_s27  ;;  %s299_s5 = int_to_ptr.hbm [resolvable:$true] %s298_s5 }
  0x43   : > { %s1942_s30 = sand.u32 1, %s1533_s26   ;;  %s1399_s22 = sshra.s32 %s299_s5, 4  ;;  %s1400_s22 = int_to_ptr.hbm [resolvable:$true] %s1399_s22 }
  0x44   : > { %s289_s3 = scalar_lea.sflag [#allocation3], %s1942_s30  ;;  %s1401_s20 = scalar_lea.hbm %s1400_s22, 8 }
  0x45   : > { %p1402_p1 = scmp.ne.s32.totalorder %s1400_s22, %s1401_s20  ;;  %p1407_p6 = scmp.lt.s32.totalorder %s1400_s22, %s1908_s0 }
  0x46   : > { %p1408_p11 = scmp.lt.s32.totalorder %s1406_s28, %s1401_s20 }
  0x47   : > { %p1404_p8 = pnand %p1402_p1, %p1313_p9 }
  0x48   : > { %p1409_p13 = por %p1408_p11, %p1407_p6 }
  0x49   : > { %p1405_p10 = pneg %p1404_p8 }
  0x4b   : > { %p1410_p0 = pnand %p1409_p13, %p1405_p10 }
  0x4d   : > { %1413 = shalt.err (!%p1410_p0)
}
  0x4e   : > { %1137 = dma.hbm_to_vmem [thread:$0]  (!%p1696_p7), %s299_s5, 128, %s301_s27, %s289_s3  }
  0x4f   : > { %s334_s18 = scalar_lea.hbm %s1910_s2, %s1694_s16  ;;  %s330_s19 = scalar_lea.vmem [#allocation7], %s1691_s14 }
  0x50   : > { %s338_s30 = sshll.u32 %s330_s19, 4  ;;  %s336_s1 = sshll.u32 %s334_s18, 4  ;;  %s339_s30 = int_to_ptr.vmem [resolvable:$true] %s338_s30  ;;  %s337_s1 = int_to_ptr.hbm [resolvable:$true] %s336_s1 }
  0x51   : > { %s1429_s22 = sshra.s32 %s337_s1, 4  ;;  %s1436_s27 = scalar_lea.hbm %s1910_s2, 16  ;;  %s1430_s22 = int_to_ptr.hbm [resolvable:$true] %s1429_s22 }
  0x52   : > { %s1431_s20 = scalar_lea.hbm %s1430_s22, 8  ;;  %p1437_p10 = scmp.lt.s32.totalorder %s1430_s22, %s1910_s2 }
  0x53   : > { %p1432_p2 = scmp.ne.s32.totalorder %s1430_s22, %s1431_s20  ;;  %p1438_p6 = scmp.lt.s32.totalorder %s1436_s27, %s1431_s20 }
  0x55   : > { %p1434_p1 = pnand %p1432_p2, %p1313_p9  ;;  %p1439_p11 = por %p1438_p6, %p1437_p10 }
  0x57   : > { %p1435_p8 = pneg %p1434_p1 }
  0x59   : > { %p1440_p13 = pnand %p1439_p11, %p1435_p8 }
  0x5b   : > { %1443 = shalt.err (!%p1440_p13)
}
  0x5c   : > { %1143 = dma.hbm_to_vmem [thread:$0]  (!%p1696_p7), %s337_s1, 128, %s339_s30, %s1706_s11  }
  0x5d   : > { %347 = sbr.rel (%p1634_p3) target bundleno = 510 (0x1fe), region = 48  ;;  %s1773_s14 = sand.u32 (!%p1634_p3), 1, %s1529_s25  }
  0x5e   : > { %s1776_s16 = sshll.u32 (!%p1634_p3), %s1773_s14, 3  ;;  %s350_s21 = scalar_lea.sflag (!%p1634_p3), [#allocation3], %s1773_s14 }
  0x5f   : > { %s353_s23 = scalar_lea.vmem (!%p1634_p3), [#allocation2], %s1776_s16 }
  0x62   : > { %1504 = dma.done.wait (%p1674_p12), %s350_s21, 128  }
  0x63   : > { %1506 = vsyncadd (%p1674_p12), %s350_s21, 4294967168  ;;  %s359_s9 = sand.u32 1, %s1629_s8   ;;  %s363_s17 = scalar_lea.vmem [#allocation5], %s1776_s16 }
  0x64   : > { %s360_s11 = scalar_lea.sflag [#allocation6], %s359_s9 }
  0x65   : > { %1508 = dma.done.wait (%p1674_p12), %s360_s11, 256  }
  0x66   : > { %1510 = vsyncadd (%p1674_p12), %s360_s11, 4294967040  ;;  %s373_s4 = scalar_lea.vmem [#allocation7], %s1776_s16  ;;  %p1943_p3 = scmp.eq.s32.totalorder %s1629_s8, 0 }
  0x68   : > { %1512 = dma.done.wait (%p1943_p3), [#allocation9], 2176   ;;  %p1944_p7 = pmov %p1943_p3 }
  0x69   : > { %p1945_p9 = pmov %p1943_p3 }
  0x6a   : > { %1514 = vsyncadd (%p1944_p7), [#allocation9], 4294965120 }
  0x6b   : > { %1516 = dma.done.wait (%p1945_p9), [#allocation12], 512   ;;  %p1946_p0 = pmov %p1943_p3 }
  0x6c   : > { %v435_v0 = vld [vmem:[%s353_s23] sm:$0xff]  ;;  %v459_v1 = vld [vmem:[%s363_s17] sm:$0xff]  ;;  %v1547_v4 = vmov 1   ;;  %v1548_v5 = vmov 3   ;;  %v1549_v20 = vmov 0   ;;  %v1550_v21 = vmov 2  }
  0x6d   : > { %1518 = vsyncadd (%p1946_p0), [#allocation12], 4294966784  ;;  %436 = vmax.xlane.f32.xlu0 %v435_v0  ;;  %v1012_v2 = vmul.f32 -1.442695, %v459_v1  ;;  %v1799_v3 = vld [vmem:[%s373_s4] sm:$0xff]  ;;  %1217 = vset.pattern.permute.xlu2 %v1547_v4  ;;  %v1551_v23 = vmov 16  }
  0x6e   : > { %1219 = vset.pattern.permute.xlu0 %v1548_v5  ;;  %657 = vperm.xlu2 %1217, %v1799_v3   ;;  %v1552_v25 = vmov 17   ;;  %v1553_v26 = vmov 18   ;;  %v1554_v27 = vmov 6   ;;  %v1555_v28 = vmov 4   ;;  %v1096_v30 = vld [vmem:[#allocation8 + $0x78] sm:$0xff]  ;;  %v1095_v32 = vld [vmem:[#allocation8 + $0x70] sm:$0xff] }
  0x6f   : > { %1237 = vpow2.f32 %v1012_v2  ;;  %1216 = vset.pattern.permute.xlu1 %v1549_v20  ;;  %v1556_v29 = vmov 20   ;;  %v1088_v31 = vld [vmem:[#allocation8 + $0x38] sm:$0xff]  ;;  %630 = vmatpush.bf16.msra.mxu1 %v1096_v30  ;;  %v1087_v33 = vld [vmem:[#allocation8 + $0x30] sm:$0xff]  ;;  %v1557_v34 = vmov 7   ;;  %v1558_v35 = vmov 5   ;;  %v1094_v36 = vld [vmem:[#allocation8 + $0x68] sm:$0xff] }
  0x70   : > { %617 = vmatpush.bf16.msra.mxu0 %v1088_v31  ;;  %v1086_v37 = vld [vmem:[#allocation8 + $0x28] sm:$0xff]  ;;  %v1559_v38 = vmov 19   ;;  %v1093_v39 = vld [vmem:[#allocation8 + $0x60] sm:$0xff]  ;;  %v1560_v40 = vmov 22   ;;  %v1561_v41 = vmov 23   ;;  %v1562_v42 = vmov 24  }
  0x71   : > { %v1563_v43 = vmov 21   ;;  %v1564_v44 = vmov 8   ;;  %v1092_v45 = vld [vmem:[#allocation8 + $0x58] sm:$0xff]  ;;  %v1085_v46 = vld [vmem:[#allocation8 + $0x20] sm:$0xff]  ;;  %v1091_v47 = vld [vmem:[#allocation8 + $0x50] sm:$0xff]  ;;  %s1078_s10 = sshll.u32 %s1629_s8, 3 }
  0x72   : > { %v1084_v48 = vld [vmem:[#allocation8 + $0x18] sm:$0xff]  ;;  %v1090_v49 = vld [vmem:[#allocation8 + $0x48] sm:$0xff]  ;;  %v1083_v50 = vld [vmem:[#allocation8 + $0x10] sm:$0xff]  ;;  %s834_s19 = scalar_lea.hbm %s1915_s7, %s1078_s10  ;;  %s434_s30 = scalar_lea.vmem [#allocation14], %s1776_s16 }
  0x73   : > { %631 = vmatpush.bf16.msra.mxu1 %v1095_v32  ;;  %v1089_v51 = vld [vmem:[#allocation8 + $0x40] sm:$0xff]  ;;  %v1082_v52 = vld [vmem:[#allocation8 + $0x8] sm:$0xff]  ;;  %s836_s1 = sshll.u32 %s434_s30, 4  ;;  %s838_s22 = sshll.u32 %s834_s19, 4  ;;  %s837_s1 = int_to_ptr.vmem [resolvable:$true] %s836_s1  ;;  %s839_s22 = int_to_ptr.hbm [resolvable:$true] %s838_s22 }
  0x74   : > { %618 = vmatpush.bf16.msra.mxu0 %v1087_v33  ;;  %v1081_v54 = vld [vmem:[#allocation8] sm:$0xff]  ;;  %v1827_v57 = vld [vmem:[#allocation11] sm:$0xff]  ;;  %v1849_v33 = vld [vmem:[#allocation13] sm:$0xff]  ;;  %s824_s8 = scalar_lea.sflag [#allocation4], %s1773_s14  ;;  %s1473_s20 = sshra.s32 %s839_s22, 4  ;;  %s1474_s20 = int_to_ptr.hbm [resolvable:$true] %s1473_s20 }
  0x75   : > { %v1238_v6 = vpop.eup %1237  ;;  %v660_v60 = vperm.slane %v1827_v57, 1  ;;  %v668_v62 = vperm.slane %v1827_v57, 2  ;;  %v653_v2 = vperm.slane %v1827_v57, 0  ;;  %v725_v30 = vperm.slane %v1827_v57, 4  ;;  %s1475_s15 = scalar_lea.hbm %s1474_s20, 8  ;;  %s1479_s5 = scalar_lea.hbm %s1915_s7, 16 }
  0x76   : > { %v463_v7 = vadd.f32 1.0, %v1238_v6  ;;  %1218 = vset.pattern.permute.xlu2 %v1550_v21  ;;  %v733_v31 = vperm.slane %v1827_v57, 7  ;;  %v739_v32 = vperm.slane %v1827_v57, 5  ;;  %p1476_p12 = scmp.ne.s32.totalorder %s1474_s20, %s1475_s15  ;;  %p1480_p8 = scmp.lt.s32.totalorder %s1474_s20, %s1915_s7 }
  0x77   : > { %665 = vperm.xlu2 %1218, %v1799_v3   ;;  %632 = vmatpush.bf16.msra.mxu1 %v1094_v36  ;;  %p1481_p10 = scmp.lt.s32.totalorder %s1479_s5, %s1475_s15 }
  0x78   : > { %1239 = vrcp.f32 %v463_v7  ;;  %v475_v10 = vand.u32 2147483648, %v463_v7  ;;  %vm469_vm0 = vweird.f32 %v463_v7  ;;  %v473_v12 = vand.u32 2147483647, %v463_v7  ;;  %619 = vmatpush.bf16.msra.mxu0 %v1086_v37  ;;  %p1477_p2 = pnand %p1476_p12, %p1681_p4 }
  0x79   : > { %p1482_p6 = por %p1481_p10, %p1480_p8 }
  0x7a   : > { %v476_v14 = vor.u32 1.1754944e-38, %v475_v10  ;;  %vm474_vm3 = vcmp.eq.f32.partialorder %v473_v12, 8.507059e+37  ;;  %p1478_p1 = pneg %p1477_p2 }
  0x7b   : > { %633 = vmatpush.bf16.msra.mxu1 %v1093_v39 }
  0x7c   : > { %620 = vmatpush.bf16.msra.mxu0 %v1085_v46  ;;  %p1483_p11 = pnand %p1482_p6, %p1478_p1 }
  0x7e   : > { %v1240_v8 = vpop.eup %1239 }
  0x7f   : > { %v465_v9 = vmul.f32 %v1240_v8, %v463_v7  ;;  %vm470_vm1 = vweird.f32 %v1240_v8  ;;  %1220 = vset.pattern.permute.xlu2 %v1551_v23  ;;  %634 = vmatpush.bf16.msra.mxu1 %v1092_v45 }
  0x80   : > { %vm471_vm2 = vmor %vm469_vm0, %vm470_vm1  ;;  %681 = vperm.xlu2 %1220, %v1799_v3   ;;  %621 = vmatpush.bf16.msra.mxu0 %v1084_v48 }
  0x81   : > { %v466_v11 = vsub.f32 1.0, %v465_v9 }
  0x83   : > { %v467_v13 = vmul.f32 %v1240_v8, %v466_v11  ;;  %635 = vmatpush.bf16.msra.mxu1 %v1091_v47 }
  0x84   : > { %622 = vmatpush.bf16.msra.mxu0 %v1083_v50 }
  0x85   : > { %v468_v15 = vadd.f32 %v1240_v8, %v467_v13 }
  0x87   : > { %v472_v17 = vsel %vm471_vm2, %v1240_v8, %v468_v15  ;;  %636 = vmatpush.bf16.msra.mxu1 %v1090_v49 }
  0x88   : > { %v1802_v19 = vsel %vm474_vm3, %v476_v14, %v472_v17  ;;  %1221 = vset.pattern.permute.xlu2 %v1552_v25  ;;  %623 = vmatpush.bf16.msra.mxu0 %v1082_v52 }
  0x89   : > { %479 = vadd.xlane.f32.xlu1 %v1802_v19  ;;  %688 = vperm.xlu2 %1221, %v1799_v3   ;;  %v482_v53 = vpack.c.bf16 %v1802_v19, %v1802_v19 }
  0x8b   : > { %637 = vmatpush.bf16.msra.mxu1 %v1089_v51  ;;  %v645_v51 = vld [vmem:[#allocation11 + $0x8] sm:$0xff] }
  0x8c   : > { %624 = vmatpush.bf16.msra.mxu0 %v1081_v54 }
  0x8e   : > { %638 = vmatmul.bf16.vlgmr.msra.gmra.mxu1 %v482_v53 }
  0x91   : > { %1222 = vset.pattern.permute.xlu2 %v1553_v26 }
  0x92   : > { %696 = vperm.xlu2 %1222, %v1799_v3  }
  0x9a   : > { %1224 = vset.pattern.permute.xlu2 %v1555_v28 }
  0x9b   : > { %722 = vperm.xlu2 %1224, %v1799_v3  }
  0xa2   : > { %650 = vperm.xlu1 %1216, %v1799_v3  }
  0xa3   : > { %1226 = vset.pattern.permute.xlu2 %v1558_v35  ;;  %v770_v35 = vperm.slane %v1849_v33, 6 }
  0xa4   : > { %736 = vperm.xlu2 %1226, %v1799_v3  }
  0xaa   : > { %1223 = vset.pattern.permute.xlu1 %v1554_v27 }
  0xab   : > { %716 = vperm.xlu1 %1223, %v1799_v3  }
  0xac   : > { %1229 = vset.pattern.permute.xlu2 %v1561_v41  ;;  %v784_v41 = vperm.slane %v1849_v33, 7 }
  0xad   : > { %781 = vperm.xlu2 %1229, %v1799_v3  }
  0xb3   : > { %1225 = vset.pattern.permute.xlu1 %v1557_v34  ;;  %v776_v34 = vperm.slane %v1849_v33, 4 }
  0xb4   : > { %730 = vperm.xlu1 %1225, %v1799_v3  }
  0xb5   : > { %1231 = vset.pattern.permute.xlu2 %v1564_v44 }
  0xb6   : > { %745 = vperm.xlu2 %1231, %v1799_v3  }
  0xbc   : > { %1227 = vset.pattern.permute.xlu1 %v1560_v40 }
  0xbd   : > { %767 = vperm.xlu1 %1227, %v1799_v3  }
  0xc5   : > { %1230 = vset.pattern.permute.xlu1 %v1563_v43 }
  0xc6   : > { %787 = vperm.xlu1 %1230, %v1799_v3  }
  0xc8   : > { %v658_v56 = vpop.permute.xlu2 %657 }
  0xc9   : > { %v661_v1 = vsub.f32 %v658_v56, %v660_v60 }
  0xcb   : > { %v662_v10 = vand.u32 2147483647, %v661_v1  ;;  %v1857_v1 = vld [vmem:[#allocation13 + $0x8] sm:$0xff] }
  0xce   : > { %1232 = vset.pattern.permute.xlu1 %v1562_v42 }
  0xcf   : > { %796 = vperm.xlu1 %1232, %v1799_v3  }
  0xd1   : > { %v666_v5 = vpop.permute.xlu2 %665 }
  0xd2   : > { %v669_v6 = vsub.f32 %v666_v5, %v668_v62 }
  0xd4   : > { %v670_v14 = vand.u32 2147483647, %v669_v6 }
  0xda   : > { %v1837_v20 = vpop.permute.xlu2 %681 }
  0xe0   : > { %v437_v16 = vpop.xlane.xlu0 %436 }
  0xe1   : > { %v438_v18 = vsub.f32 %v435_v0, %v437_v16 }
  0xe3   : > { %v439_v22 = vmul.f32 1.442695, %v438_v18  ;;  %v1839_v21 = vpop.permute.xlu2 %688 }
  0xe5   : > { %1241 = vpow2.f32 %v439_v22 }
  0xeb   : > { %v1806_v24 = vpop.eup %1241 }
  0xec   : > { %441 = vadd.xlane.f32.xlu0 %v1806_v24  ;;  %v1841_v22 = vpop.permute.xlu2 %696 }
  0xf5   : > { %v723_v25 = vpop.permute.xlu2 %722 }
  0xf6   : > { %v726_v37 = vmax.f32 %v723_v25, %v725_v30  ;;  %v752_v53 = vmin.f32 %v723_v25, %v725_v30 }
  0xfc   : > { %v1829_v58 = vpop.xlane.xlu1 %479 }
  0xfe   : > { %v737_v27 = vpop.permute.xlu2 %736 }
  0xff   : > { %v740_v39 = vmax.f32 %v737_v27, %v739_v32  ;;  %v755_v60 = vmin.f32 %v737_v27, %v739_v32  ;;  %v691_v27 = vperm.slane %v1849_v33, 1 }
 0x100   : > { %673 = vperm.xlu0 %1219, %v1799_v3  }
 0x107   : > { %v782_v40 = vpop.permute.xlu2 %781 }
 0x108   : > { %1228 = vset.pattern.permute.xlu0 %v1556_v29  ;;  %v785_v49 = vmin.f32 %v782_v40, %v784_v41 }
 0x109   : > { %773 = vperm.xlu0 %1228, %v1799_v3  }
 0x111   : > { %1233 = vset.pattern.permute.xlu0 %v1559_v38 }
 0x112   : > { %704 = vperm.xlu0 %1233, %v1799_v3  }
 0x114   : > { %v651_v8 = vpop.permute.xlu1 %650 }
 0x115   : > { %v654_v11 = vsub.f32 %v651_v8, %v653_v2 }
 0x117   : > { %v655_v15 = vand.u32 2147483647, %v654_v11 }
 0x119   : > { %v663_v17 = vadd.f32 %v662_v10, %v655_v15 }
 0x11a   : > { %1234 = vset.pattern.permute.xlu0 %v1562_v42  ;;  %v790_v42 = vperm.slane %v1849_v33, 5 }
 0x11b   : > { %v1835_v19 = vadd.f32 %v670_v14, %v663_v17 }
 0x11d   : > { %v717_v23 = vpop.permute.xlu1 %716 }
 0x126   : > { %v731_v26 = vpop.permute.xlu1 %730 }
 0x127   : > { %v734_v38 = vmin.f32 %v731_v26, %v733_v31  ;;  %v754_v54 = vmax.f32 %v731_v26, %v733_v31  ;;  %v684_v26 = vperm.slane %v1849_v33, 0 }
 0x129   : > { %v741_v46 = vsub.f32 %v734_v38, %v740_v39  ;;  %v756_v5 = vsub.f32 %v754_v54, %v755_v60  ;;  %v685_v32 = vsub.f32 %v1837_v20, %v684_v26  ;;  %v1235_v54 = vld [vmem:[#allocation10 + $0x1] ss:$0 sm:$0xff]  ;;  %v817_v60 = vperm.slane %v1857_v1, 2 }
 0x12f   : > { %v768_v29 = vpop.permute.xlu1 %767 }
 0x130   : > { %v771_v47 = vmin.f32 %v768_v29, %v770_v35 }
 0x138   : > { %v788_v48 = vpop.permute.xlu1 %787 }
 0x139   : > { %v791_v50 = vmax.f32 %v788_v48, %v790_v42  ;;  %v806_v11 = vmin.f32 %v788_v48, %v790_v42 }
 0x13b   : > { %v792_v62 = vsub.f32 %v785_v49, %v791_v50 }
 0x13d   : > { %v793_v10 = vmax.f32 %v792_v62, 0.0  ;;  %v518_v62 = vmul.f32 %v1235_v54, %v1829_v58 }
 0x15f   : > { %v442_v55 = vpop.xlane.xlu0 %441 }
 0x160   : > { %1243 = vrcp.f32 %v442_v55  ;;  %v454_v0 = vand.u32 2147483648, %v442_v55  ;;  %v452_v4 = vand.u32 2147483647, %v442_v55  ;;  %vm448_vm5 = vweird.f32 %v442_v55 }
 0x162   : > { %v455_v9 = vor.u32 1.1754944e-38, %v454_v0  ;;  %vm453_vm7 = vcmp.eq.f32.partialorder %v452_v4, 8.507059e+37  ;;  %v746_v0 = vpop.permute.xlu2 %745  ;;  %v799_v4 = vperm.slane %v1857_v1, 0 }
 0x166   : > { %v1244_v59 = vpop.eup %1243 }
 0x167   : > { %v444_v61 = vmul.f32 %v1244_v59, %v442_v55  ;;  %vm449_vm4 = vweird.f32 %v1244_v59  ;;  %v1855_v55 = vpop.f32.mrf.mxu1 }
 0x168   : > { %vm450_vm6 = vmor %vm448_vm5, %vm449_vm4 }
 0x169   : > { %v445_v63 = vsub.f32 1.0, %v444_v61 }
 0x16b   : > { %v446_v3 = vmul.f32 %v1244_v59, %v445_v63  ;;  %v748_v63 = vperm.slane %v645_v51, 0 }
 0x16d   : > { %v447_v7 = vadd.f32 %v1244_v59, %v446_v3 }
 0x16f   : > { %v451_v12 = vsel %vm450_vm6, %v1244_v59, %v447_v7  ;;  %v742_v59 = vmax.f32 %v741_v46, 0.0  ;;  %v802_v7 = vmax.f32 %v768_v29, %v770_v35  ;;  %v641_v14 = vpop.f32.mrf.mxu1  ;;  %v699_v35 = vperm.slane %v1849_v33, 2 }
 0x170   : > { %v456_v13 = vsel %vm453_vm7, %v455_v9, %v451_v12  ;;  %v805_v9 = vmax.f32 %v782_v40, %v784_v41  ;;  %v749_v12 = vadd.f32 %v748_v63, %v746_v0  ;;  %v686_v40 = vand.u32 2147483647, %v685_v32 }
 0x171   : > { %v458_v16 = vmul.f32 %v1806_v24, %v456_v13  ;;  %v719_v24 = vperm.slane %v1827_v57, 6  ;;  %v797_v13 = vpop.permute.xlu1 %796  ;;  %v700_v42 = vsub.f32 %v1841_v22, %v699_v35  ;;  %v711_v0 = vperm.slane %v1857_v1, 1 }
 0x172   : > { %v1843_v28 = vpop.permute.xlu0 %673  ;;  %v807_v17 = vsub.f32 %v805_v9, %v806_v11  ;;  %v800_v25 = vadd.f32 %v799_v4, %v797_v13 }
 0x173   : > { %v481_v18 = vpack.c.bf16 %v458_v16, %v458_v16  ;;  %v720_v36 = vmin.f32 %v717_v23, %v719_v24  ;;  %v751_v52 = vmax.f32 %v717_v23, %v719_v24  ;;  %v701_v49 = vand.u32 2147483647, %v700_v42 }
 0x175   : > { %625 = vmatmul.bf16.vlgmr.msra.gmra.mxu0 %v481_v18  ;;  %v727_v45 = vsub.f32 %v720_v36, %v726_v37  ;;  %v753_v3 = vsub.f32 %v751_v52, %v752_v53 }
 0x177   : > { %v728_v56 = vmax.f32 %v727_v45, 0.0  ;;  %v757_v15 = vmul.f32 %v756_v5, %v753_v3 }
 0x179   : > { %v743_v8 = vmul.f32 %v742_v59, %v728_v56 }
 0x17b   : > { %v774_v43 = vpop.permute.xlu0 %773  ;;  %v750_v18 = vsub.f32 %v749_v12, %v743_v8  ;;  %v758_v37 = vmul.f32 %v757_v15, %v743_v8 }
 0x17c   : > { %v777_v44 = vmax.f32 %v774_v43, %v776_v34  ;;  %v803_v2 = vmin.f32 %v774_v43, %v776_v34  ;;  %v692_v34 = vsub.f32 %v1839_v21, %v691_v27  ;;  %v707_v43 = vperm.slane %v1849_v33, 3 }
 0x17d   : > { %v762_v30 = vmul.f32 %v757_v15, %v750_v18  ;;  %v759_v31 = vsub.f32 %v757_v15, %v750_v18  ;;  %v676_v21 = vperm.slane %v1827_v57, 3 }
 0x17e   : > { %v778_v61 = vsub.f32 %v771_v47, %v777_v44  ;;  %v804_v16 = vsub.f32 %v802_v7, %v803_v2  ;;  %v693_v41 = vand.u32 2147483647, %v692_v34  ;;  %v1236_v2 = vld [vmem:[#allocation10] ss:$0 sm:$0xff] }
 0x17f   : > { %1245 = vrcp.f32 %v762_v30  ;;  %v760_v38 = vmul.f32 %v759_v31, %v750_v18  ;;  %v677_v22 = vsub.f32 %v1843_v28, %v676_v21  ;;  %v520_v28 = vadd.f32 %v1236_v2, %v518_v62 }
 0x180   : > { %v779_v6 = vmax.f32 %v778_v61, 0.0  ;;  %v808_v24 = vmul.f32 %v807_v17, %v804_v16  ;;  %v694_v48 = vadd.f32 %v693_v41, %v686_v40 }
 0x181   : > { %v761_v45 = vsub.f32 %v758_v37, %v760_v38  ;;  %v678_v63 = vand.u32 2147483647, %v677_v22 }
 0x182   : > { %v794_v23 = vmul.f32 %v793_v10, %v779_v6  ;;  %v702_v56 = vadd.f32 %v701_v49, %v694_v48 }
 0x183   : > { %v679_v5 = vadd.f32 %v678_v63, %v1835_v19 }
 0x184   : > { %v801_v29 = vsub.f32 %v800_v25, %v794_v23  ;;  %v705_v44 = vpop.permute.xlu0 %704  ;;  %v809_v46 = vmul.f32 %v808_v24, %v794_v23 }
 0x185   : > { %v1246_v47 = vpop.eup %1245  ;;  %v708_v50 = vsub.f32 %v705_v44, %v707_v43 }
 0x186   : > { %v813_v36 = vmul.f32 %v808_v24, %v801_v29  ;;  %v810_v39 = vsub.f32 %v808_v24, %v801_v29  ;;  %v764_v51 = vmul.f32 %v1246_v47, %v761_v45 }
 0x187   : > { %v709_v33 = vand.u32 2147483647, %v708_v50 }
 0x188   : > { %1247 = vrcp.f32 %v813_v36  ;;  %v811_v20 = vmul.f32 %v810_v39, %v801_v29  ;;  %v765_v59 = vsub.f32 0.0, %v764_v51 }
 0x189   : > { %v710_v57 = vadd.f32 %v709_v33, %v702_v56 }
 0x18a   : > { %v812_v52 = vsub.f32 %v809_v46, %v811_v20  ;;  %v818_v3 = vmul.f32 %v817_v60, %v765_v59 }
 0x18b   : > { %v712_v6 = vmul.f32 %v711_v0, %v710_v57 }
 0x18d   : > { %v713_v10 = vmax.f32 %v679_v5, %v712_v6 }
 0x18e   : > { %v1248_v53 = vpop.eup %1247 }
 0x18f   : > { %v815_v61 = vmul.f32 %v1248_v53, %v812_v52 }
 0x191   : > { %v816_v4 = vsub.f32 0.0, %v815_v61 }
 0x193   : > { %v819_v9 = vadd.f32 %v818_v3, %v816_v4 }
 0x195   : > { %v820_v11 = vmax.f32 %v765_v59, %v819_v9 }
 0x1f2   : > { %v626_v7 = vpop.f32.mrf.mxu0 }
 0x1f3   : > { %v627_v8 = vadd.f32 %v626_v7, %v520_v28 }
 0x1f5   : > { %v640_v58 = vadd.f32 %v1855_v55, %v627_v8 }
 0x1f7   : > { %v714_v1 = vadd.f32 %v713_v10, %v640_v58 }
 0x1f9   : > { %v821_v19 = vadd.f32 %v820_v11, %v714_v1 }
 0x1fa   : > { %v628_v12 = vpop.f32.mrf.mxu0 }
 0x1fb   : > { %822 = vst [vmem:[%s434_s30] sm:$0xff] %v821_v19 }
 0x1fc   : > { %1486 = shalt.err (!%p1483_p11)
}
 0x1fd   : > { %1119 = dma.vmem_to_hbm [thread:$0]  (%p1681_p4), %s837_s1, 128, %s839_s22, %s824_s8  }
 0x1fe PF: > { %s1947_s14 = sld [smem:[#allocation20_spill]]  ;;  %s850_s21 = sand.u32 1, %s1525_s24  }
 0x1ff   : > { %s851_s23 = scalar_lea.sflag [#allocation4], %s850_s21 }
 0x204   : > { %p1948_p13 = scmp.ge.s32.totalorder %s1947_s14, 2 }
 0x206   : > { %p1145_p3 = pnand %p1948_p13, %p1685_p5 }
 0x208   : > { %p1146_p7 = pneg %p1145_p3 }
 0x20a   : > { %1520 = dma.done.wait (%p1146_p7), %s851_s23, 128  }
 0x20b   : > { %1522 = vsyncadd (%p1146_p7), %s851_s23, 4294967168  ;;  %s1949_s27 = sld [smem:[#allocation21_spill]]  ;;  %s1951_s24 = smov %s1529_s25 }
 0x20c   : > { %s1950_s9 = sld [smem:[#allocation22_spill]]  ;;  %s1952_s25 = smov %s1533_s26 }
 0x211   : > { %p25_p9 = scmp.ge.s32.totalorder %s1949_s27, 4  }
 0x212   : > { %s1953_s26 = smov %s1950_s9 }
 0x213   :  { %27 = sbr.rel (!%p25_p9) target bundleno = 14 (0xe), region = 133 }
 0x218   :  { %857 = vsyncpa [#allocation3], 1 }
 0x219   :  { %859 = vsyncpa [#allocation3 + $0x1], 1 }
 0x21a   :  { %860 = vsyncpa [#allocation6], 1 }
 0x21b   :  { %862 = vsyncpa [#allocation6 + $0x1], 1 }
 0x21c   :  { %863 = vsyncpa [#allocation9], 1 }
 0x21d   :  { %864 = vsyncpa [#allocation12], 1 }
 0x21e   :  { %865 = vsyncpa [#allocation4], 1 }
 0x21f   :  { %867 = vsyncpa [#allocation4 + $0x1], 1 }

</bundles_post_ra>
